<compile_context>
chip_gen: v7x
topology: tpu7x:2x2x1
jax: 0.10.0
libtpu: 0.0.40
codegen_flags: <defaults>
</compile_context>

<pallas_src>
import functools

import jax
import jax.numpy as jnp
from jax.experimental import pallas as pl
from jax.experimental.pallas import tpu as pltpu


def _mse_mask_loss_kernel(sr_ref, hr_ref, mask_ref, out_ref,
                          mse_acc, mask_acc, *,
                          n_rows, hw, block_rows, block_cols,
                          needs_row_mask, needs_col_mask):
    """Grid step (i, j): accumulate HW-chunk j of row block i; finalize at last j."""
    i = pl.program_id(0)
    j = pl.program_id(1)
    n_hw = pl.num_programs(1)

    # Cast to f32 in-kernel (VPU) instead of materializing f32 copies in HBM.
    sr = sr_ref[...].astype(jnp.float32)       # (TN, THW)
    hr = hr_ref[...].astype(jnp.float32)       # (TN, THW)
    m = mask_ref[...].astype(jnp.float32)      # (TN, THW)

    diff = sr - hr
    mse = diff * diff * m

    if needs_col_mask:
        # Last HW block may be OOB-padded with unspecified data (possibly
        # Inf/NaN): zero it out of BOTH sums before accumulating.
        col_ids = j * block_cols + jax.lax.broadcasted_iota(jnp.int32, mse.shape, 1)
        col_valid = col_ids < hw
        mse = jnp.where(col_valid, mse, 0.0)
        m = jnp.where(col_valid, m, 0.0)

    mse_part = jnp.sum(mse, axis=-1, keepdims=True)    # (TN, 1)
    mask_part = jnp.sum(m, axis=-1, keepdims=True)     # (TN, 1)

    @pl.when(j == 0)
    def _():
        mse_acc[...] = jnp.zeros_like(mse_acc)
        mask_acc[...] = jnp.zeros_like(mask_acc)

    mse_acc[...] += mse_part
    mask_acc[...] += mask_part

    @pl.when(j == n_hw - 1)
    def _():
        mse_sum = mse_acc[...]
        mask_sum = mask_acc[...]
        if needs_row_mask:
            # Mask padded rows BEFORE the divide so no Inf/NaN is ever formed.
            row_ids = (i * block_rows
                       + jax.lax.broadcasted_iota(jnp.int32, mse_sum.shape, 0))
            row_valid = row_ids < n_rows
            mse_sum = jnp.where(row_valid, mse_sum, 0.0)
            mask_sum = jnp.where(row_valid, mask_sum, 0.0)
        ratio = mse_sum / (mask_sum + 1.0)              # (TN, 1); OOB rows -> 0/1
        partial = jnp.sum(ratio)                        # scalar f32
        # Splat to all 128 lanes -> plain unmasked vst; wrapper reads lane 0.
        out_ref[...] = jnp.full(out_ref.shape, partial, dtype=jnp.float32)


def mse_mask_loss(sr: jax.Array, hr: jax.Array, mask: jax.Array,
                  *, target_block_bytes: int = 2 * 1024 * 1024) -> jax.Array:
    """Pallas implementation of MseMaskLoss.forward. Inputs are NCHW."""
    assert sr.shape == hr.shape == mask.shape
    B, C, H, W = sr.shape
    N = B * C
    HW = H * W

    # Free reshapes; keep native dtypes (cast happens inside the kernel).
    sr2 = sr.reshape(N, HW)
    hr2 = hr.reshape(N, HW)
    mask2 = mask.reshape(N, HW)

    itemsizes = [jnp.dtype(a.dtype).itemsize for a in (sr2, hr2, mask2)]
    max_itemsize = max(itemsizes)
    budget_elems = max(8 * 128, target_block_bytes // max_itemsize)
    n_pad8 = ((N + 7) // 8) * 8

    # --- Choose the (TN, THW) block. ---
    if HW * 8 <= budget_elems:
        # An 8-row block at full HW fits the budget: no HW tiling needed.
        THW = HW
        TN = max(8, ((budget_elems // HW) // 8) * 8)
    else:
        # Large images: tile the HW axis in multiples of 128, keep TN at 8.
        TN = 8
        THW = max(128, (budget_elems // (TN * 128)) * 128)
        THW = min(THW, ((HW + 127) // 128) * 128)
        if THW > HW:
            THW = HW
    # Cap TN so the row ("parallel") axis has >= 2 blocks when possible
    # (keeps both v7x TensorCores busy), and never exceeds the padded N.
    mc_cap = max(8, ((n_pad8 // 2) // 8) * 8) if n_pad8 >= 16 else 8
    TN = max(8, min(TN, n_pad8, mc_cap))

    num_row_blocks = pl.cdiv(N, TN)
    num_hw_blocks = pl.cdiv(HW, THW)
    needs_row_mask = (N % TN) != 0
    needs_col_mask = (HW % THW) != 0

    kernel = functools.partial(
        _mse_mask_loss_kernel,
        n_rows=N, hw=HW, block_rows=TN, block_cols=THW,
        needs_row_mask=needs_row_mask, needs_col_mask=needs_col_mask)

    in_spec = pl.BlockSpec((TN, THW), lambda i, j: (i, j))

    # --- Explicit VMEM budget: 2x double-buffered inputs + f32 cast temps
    #     + scratch accumulators + output, with ~30% headroom. ---
    in_block_bytes = TN * THW * sum(itemsizes)
    f32_temp_bytes = 3 * TN * THW * 4
    scratch_bytes = 2 * TN * 128 * 4          # (TN,1) f32 pads to (TN,128)
    out_bytes = 2 * 128 * 4
    vmem_limit = int(1.3 * (2 * in_block_bytes + f32_temp_bytes
                            + scratch_bytes + out_bytes))
    vmem_limit = max(vmem_limit, 8 * 1024 * 1024)
    vmem_limit = min(vmem_limit, 56 * 1024 * 1024)   # stay inside v7x 64 MiB

    bytes_accessed = (
        sr2.size * sr2.dtype.itemsize
        + hr2.size * hr2.dtype.itemsize
        + mask2.size * mask2.dtype.itemsize
        + num_row_blocks * 128 * 4
    )

    out = pl.pallas_call(
        kernel,
        out_shape=jax.ShapeDtypeStruct((num_row_blocks, 128), jnp.float32),
        grid_spec=pltpu.PrefetchScalarGridSpec(
            num_scalar_prefetch=0,
            grid=(num_row_blocks, num_hw_blocks),
            in_specs=[in_spec, in_spec, in_spec],
            out_specs=pl.BlockSpec((1, 128), lambda i, j: (i, 0)),
            scratch_shapes=[pltpu.VMEM((TN, 1), jnp.float32),
                            pltpu.VMEM((TN, 1), jnp.float32)],
        ),
        compiler_params=pltpu.CompilerParams(
            dimension_semantics=("parallel", "arbitrary"),
            vmem_limit_bytes=vmem_limit,
        ),
        cost_estimate=pl.CostEstimate(
            flops=6 * N * HW,
            transcendentals=0,
            bytes_accessed=int(bytes_accessed),
        ),
    )(sr2, hr2, mask2)

    # Tiny final reduction + mean over the N = B*C rows (all 128 lanes of each
    # output row hold the same partial sum; read lane 0).
    return jnp.sum(out[:, 0]) / jnp.float32(N)


def _reference(sr, hr, mask):
    sr = sr.astype(jnp.float32)
    hr = hr.astype(jnp.float32)
    mask = mask.astype(jnp.float32)
    mse = jnp.square(sr - hr) * mask
    mse_sum = jnp.sum(mse, axis=(2, 3))
    mask_sum = jnp.sum(mask, axis=(2, 3))
    result = mse_sum / (mask_sum + 1.0)
    return jnp.mean(result)


if __name__ == "__main__":
    key = jax.random.PRNGKey(0)

    # Case 1: small shape (N = B*C = 8, exact tiling), f32 inputs.
    k_sr, k_hr, k_mask, key = jax.random.split(key, 4)
    B, C, H, W = 2, 4, 16, 16
    sr = jax.random.normal(k_sr, (B, C, H, W), dtype=jnp.float32)
    hr = jax.random.normal(k_hr, (B, C, H, W), dtype=jnp.float32)
    mask = (jax.random.uniform(k_mask, (B, C, H, W)) > 0.5).astype(jnp.float32)

    loss = mse_mask_loss(sr, hr, mask)
    jax.block_until_ready(loss)
    ref = _reference(sr, hr, mask)
    assert jnp.allclose(loss, ref, rtol=1e-5, atol=1e-6), (loss, ref)

    # Case 2: N not a multiple of 8 (row masking + 2 row blocks), bf16 sr/hr
    # with f32 mask (in-kernel cast path).
    k_sr, k_hr, k_mask, key = jax.random.split(key, 4)
    B2, C2, H2, W2 = 3, 5, 16, 16
    sr2 = jax.random.normal(k_sr, (B2, C2, H2, W2), dtype=jnp.float32).astype(jnp.bfloat16)
    hr2 = jax.random.normal(k_hr, (B2, C2, H2, W2), dtype=jnp.float32).astype(jnp.bfloat16)
    mask2 = (jax.random.uniform(k_mask, (B2, C2, H2, W2)) > 0.5).astype(jnp.float32)

    loss2 = mse_mask_loss(sr2, hr2, mask2)
    jax.block_until_ready(loss2)
    ref2 = _reference(sr2, hr2, mask2)
    assert jnp.allclose(loss2, ref2, rtol=1e-5, atol=1e-6), (loss2, ref2)

    # Case 3: force HW tiling + ragged last HW block (HW = 400, THW = 256) via
    # a tiny block-byte target, exercising the in-kernel column masking and
    # the scratch-accumulator reduction path.
    k_sr, k_hr, k_mask, key = jax.random.split(key, 4)
    B3, C3, H3, W3 = 2, 4, 20, 20
    sr3 = jax.random.normal(k_sr, (B3, C3, H3, W3), dtype=jnp.float32)
    hr3 = jax.random.normal(k_hr, (B3, C3, H3, W3), dtype=jnp.float32)
    mask3 = (jax.random.uniform(k_mask, (B3, C3, H3, W3)) > 0.5).astype(jnp.float32)

    loss3 = mse_mask_loss(sr3, hr3, mask3, target_block_bytes=8 * 1024)
    jax.block_until_ready(loss3)
    ref3 = _reference(sr3, hr3, mask3)
    assert jnp.allclose(loss3, ref3, rtol=1e-5, atol=1e-6), (loss3, ref3)

    print("KERNEL_OK")
</pallas_src>

<mosaic_0001>
module attributes {stable_mosaic.version = 11 : i64} {
  func.func @_mse_mask_loss_kernel(%arg0: i32, %arg1: i32, %arg2: memref<8x256xf32, #tpu.memory_space<vmem>>, %arg3: memref<8x256xf32, #tpu.memory_space<vmem>>, %arg4: memref<8x256xf32, #tpu.memory_space<vmem>>, %arg5: memref<1x128xf32, #tpu.memory_space<vmem>>, %arg6: memref<8x1xf32, #tpu.memory_space<vmem>>, %arg7: memref<8x1xf32, #tpu.memory_space<vmem>>) attributes {dimension_semantics = [#tpu.dimension_semantics<parallel>, #tpu.dimension_semantics<arbitrary>], iteration_bounds = array<i64: 1, 1>, scalar_prefetch = 0 : i64, scratch_operands = 2 : i64, tpu.core_type = #tpu.core_type<tc>, window_params = [{transform_indices = @transform_0, window_bounds = array<i64: 8, 256>}, {transform_indices = @transform_1, window_bounds = array<i64: 8, 256>}, {transform_indices = @transform_2, window_bounds = array<i64: 8, 256>}, {transform_indices = @transform_3, window_bounds = array<i64: 1, 128>}]} {
    %c0 = arith.constant 0 : index
    %c0_0 = arith.constant 0 : index
    %0 = vector.load %arg2[%c0, %c0_0] : memref<8x256xf32, #tpu.memory_space<vmem>>, vector<8x256xf32>
    %c0_1 = arith.constant 0 : index
    %c0_2 = arith.constant 0 : index
    %1 = vector.load %arg3[%c0_1, %c0_2] : memref<8x256xf32, #tpu.memory_space<vmem>>, vector<8x256xf32>
    %c0_3 = arith.constant 0 : index
    %c0_4 = arith.constant 0 : index
    %2 = vector.load %arg4[%c0_3, %c0_4] : memref<8x256xf32, #tpu.memory_space<vmem>>, vector<8x256xf32>
    %3 = arith.subf %0, %1 : vector<8x256xf32>
    %4 = arith.mulf %3, %3 : vector<8x256xf32>
    %5 = arith.mulf %4, %2 : vector<8x256xf32>
    %cst = arith.constant dense<0.000000e+00> : vector<8xf32>
    %6 = vector.multi_reduction <add>, %5, %cst [1] : vector<8x256xf32> to vector<8xf32>
    %7 = vector.shape_cast %6 : vector<8xf32> to vector<8x1xf32>
    %cst_5 = arith.constant dense<0.000000e+00> : vector<8xf32>
    %8 = vector.multi_reduction <add>, %2, %cst_5 [1] : vector<8x256xf32> to vector<8xf32>
    %9 = vector.shape_cast %8 : vector<8xf32> to vector<8x1xf32>
    %c0_i32 = arith.constant 0 : i32
    %10 = arith.cmpi eq, %arg1, %c0_i32 : i32
    %11 = arith.extui %10 : i1 to i32
    %c0_i32_6 = arith.constant 0 : i32
    %12 = arith.cmpi ne, %11, %c0_i32_6 : i32
    scf.if %12 {
      %cst_17 = arith.constant 0.000000e+00 : f32
      %22 = vector.broadcast %cst_17 : f32 to vector<8x1xf32>
      %c0_18 = arith.constant 0 : index
      %c0_19 = arith.constant 0 : index
      %23 = vector.load %arg6[%c0_18, %c0_19] : memref<8x1xf32, #tpu.memory_space<vmem>>, vector<8x1xf32>
      tpu.vector_store %arg6[%c0_18, %c0_19], %22 {strides = array<i32>} : memref<8x1xf32, #tpu.memory_space<vmem>>, vector<8x1xf32>,
      %cst_20 = arith.constant 0.000000e+00 : f32
      %24 = vector.broadcast %cst_20 : f32 to vector<8x1xf32>
      %c0_21 = arith.constant 0 : index
      %c0_22 = arith.constant 0 : index
      %25 = vector.load %arg7[%c0_21, %c0_22] : memref<8x1xf32, #tpu.memory_space<vmem>>, vector<8x1xf32>
      tpu.vector_store %arg7[%c0_21, %c0_22], %24 {strides = array<i32>} : memref<8x1xf32, #tpu.memory_space<vmem>>, vector<8x1xf32>,
    } else {
    }
    %c0_7 = arith.constant 0 : index
    %c0_8 = arith.constant 0 : index
    %13 = vector.load %arg6[%c0_7, %c0_8] : memref<8x1xf32, #tpu.memory_space<vmem>>, vector<8x1xf32>
    %14 = arith.addf %13, %7 : vector<8x1xf32>
    %c0_9 = arith.constant 0 : index
    %c0_10 = arith.constant 0 : index
    %15 = vector.load %arg6[%c0_9, %c0_10] : memref<8x1xf32, #tpu.memory_space<vmem>>, vector<8x1xf32>
    tpu.vector_store %arg6[%c0_9, %c0_10], %14 {strides = array<i32>} : memref<8x1xf32, #tpu.memory_space<vmem>>, vector<8x1xf32>,
    %c0_11 = arith.constant 0 : index
    %c0_12 = arith.constant 0 : index
    %16 = vector.load %arg7[%c0_11, %c0_12] : memref<8x1xf32, #tpu.memory_space<vmem>>, vector<8x1xf32>
    %17 = arith.addf %16, %9 : vector<8x1xf32>
    %c0_13 = arith.constant 0 : index
    %c0_14 = arith.constant 0 : index
    %18 = vector.load %arg7[%c0_13, %c0_14] : memref<8x1xf32, #tpu.memory_space<vmem>>, vector<8x1xf32>
    tpu.vector_store %arg7[%c0_13, %c0_14], %17 {strides = array<i32>} : memref<8x1xf32, #tpu.memory_space<vmem>>, vector<8x1xf32>,
    %c0_i32_15 = arith.constant 0 : i32
    %19 = arith.cmpi eq, %arg1, %c0_i32_15 : i32
    %20 = arith.extui %19 : i1 to i32
    %c0_i32_16 = arith.constant 0 : i32
    %21 = arith.cmpi ne, %20, %c0_i32_16 : i32
    scf.if %21 {
      %c0_17 = arith.constant 0 : index
      %c0_18 = arith.constant 0 : index
      %22 = vector.load %arg6[%c0_17, %c0_18] : memref<8x1xf32, #tpu.memory_space<vmem>>, vector<8x1xf32>
      %c0_19 = arith.constant 0 : index
      %c0_20 = arith.constant 0 : index
      %23 = vector.load %arg7[%c0_19, %c0_20] : memref<8x1xf32, #tpu.memory_space<vmem>>, vector<8x1xf32>
      %cst_21 = arith.constant 1.000000e+00 : f32
      %24 = vector.broadcast %cst_21 : f32 to vector<8x1xf32>
      %25 = arith.addf %23, %24 : vector<8x1xf32>
      %26 = arith.divf %22, %25 : vector<8x1xf32>
      %27 = vector.shape_cast %26 : vector<8x1xf32> to vector<1x8x1xf32>
      %cst_22 = arith.constant dense<0.000000e+00> : vector<1xf32>
      %28 = vector.multi_reduction <add>, %27, %cst_22 [1, 2] : vector<1x8x1xf32> to vector<1xf32>
      %29 = vector.shape_cast %28 : vector<1xf32> to vector<1x1x1xf32>
      %30 = vector.extract %29[0, 0, 0] : f32 from vector<1x1x1xf32>
      %31 = vector.broadcast %30 : f32 to vector<1x128xf32>
      %c0_23 = arith.constant 0 : index
      %c0_24 = arith.constant 0 : index
      %32 = vector.load %arg5[%c0_23, %c0_24] : memref<1x128xf32, #tpu.memory_space<vmem>>, vector<1x128xf32>
      tpu.vector_store %arg5[%c0_23, %c0_24], %31 {strides = array<i32>} : memref<1x128xf32, #tpu.memory_space<vmem>>, vector<1x128xf32>,
    } else {
    }
    return
  }
  func.func @transform_0(%arg0: i32, %arg1: i32) -> (i32, i32) {
    %c0_i32 = arith.constant 0 : i32
    return %arg0, %arg1 : i32, i32
  }
  func.func @transform_1(%arg0: i32, %arg1: i32) -> (i32, i32) {
    %c0_i32 = arith.constant 0 : i32
    return %arg0, %arg1 : i32, i32
  }
  func.func @transform_2(%arg0: i32, %arg1: i32) -> (i32, i32) {
    %c0_i32 = arith.constant 0 : i32
    return %arg0, %arg1 : i32, i32
  }
  func.func @transform_3(%arg0: i32, %arg1: i32) -> (i32, i32) {
    %c0_i32 = arith.constant 0 : i32
    %c0_i32_0 = arith.constant 0 : i32
    return %arg0, %c0_i32 : i32, i32
  }
}

</mosaic_0001>

<bundles_post_ra>
// kernel: tpu_custom_call.1
= control target key start
LH: loop header
LB: loop body
LE: loop exit
PB: predicated region body
PF: predicated region fallthrough
CT: control target
= control target key end

     0   :  { %8 = vsyncpa [#allocation5], 0  ;;  %s299_s0 = inlined_call_operand.hbm [shape: f32[8,256], index: 0, kind: input, shape index: {}]   ;;  %s300_s1 = inlined_call_operand.hbm [shape: f32[8,256], index: 1, kind: input, shape index: {}]   ;;  %s301_s2 = inlined_call_operand.hbm [shape: f32[8,256], index: 2, kind: input, shape index: {}]   ;;  %s302_s3 = inlined_call_operand.hbm [shape: f32[1,128], index: 3, kind: output, shape index: {}]  }
   0x1   :  { %9 = vsyncpa [#allocation8], 0 }
   0x2   :  { %10 = vsyncpa [#allocation6], 0  ;;  %s221_s12 = smov [#allocation7]   ;;  %s222_s14 = smov [#allocation4]  }
   0x3   :  { %s27_s13 = sshll.u32 %s221_s12, 4  ;;  %s17_s15 = sshll.u32 %s222_s14, 4  ;;  %s28_s13 = int_to_ptr.vmem [resolvable:$true] %s27_s13  ;;  %s18_s15 = int_to_ptr.vmem [resolvable:$true] %s17_s15 }
   0x4   :  { %s127_s18 = scalar_lea.hbm %s300_s1, 256 }
   0x5   :  { %p128_p0 = scmp.ne.s32.totalorder %s300_s1, %s127_s18  ;;  %p131_p1 = scmp.lt.u32.totalorder %s127_s18, %s300_s1 }
   0x7   :  { %p133_p2 = pnand %p131_p1, %p128_p0 }
   0x9   :  { %136 = shalt.err (!%p133_p2)
}
   0xa   :  { %s137_s23 = scalar_lea.vmem %s28_s13, 256  ;;  %p142_p4 = scmp.lt.s32.totalorder %s28_s13, %s28_s13 }
   0xb   :  { %p138_p3 = scmp.ne.s32.totalorder %s28_s13, %s137_s23  ;;  %p143_p5 = scmp.lt.s32.totalorder %s137_s23, %s137_s23 }
   0xd   :  { %p144_p6 = por %p143_p5, %p142_p4 }
   0xf   :  { %p145_p7 = pnand %p144_p6, %p138_p3 }
  0x11   :  { %148 = shalt.err (!%p145_p7)
}
  0x12   :  { %30 = dma.hbm_to_vmem [thread:$0]  %s300_s1, 256, %s28_s13, [#allocation8]  }
  0x13   :  { %s149_s28 = scalar_lea.hbm %s299_s0, 256 }
  0x14   :  { %p150_p8 = scmp.ne.s32.totalorder %s299_s0, %s149_s28  ;;  %p153_p9 = scmp.lt.u32.totalorder %s149_s28, %s299_s0 }
  0x16   :  { %p155_p10 = pnand %p153_p9, %p150_p8 }
  0x18   :  { %158 = shalt.err (!%p155_p10)
}
  0x19   :  { %s159_s6 = scalar_lea.vmem %s18_s15, 256  ;;  %p164_p12 = scmp.lt.s32.totalorder %s18_s15, %s18_s15 }
  0x1a   :  { %p160_p11 = scmp.ne.s32.totalorder %s18_s15, %s159_s6  ;;  %p165_p13 = scmp.lt.s32.totalorder %s159_s6, %s159_s6 }
  0x1c   :  { %p166_p0 = por %p165_p13, %p164_p12 }
  0x1e   :  { %p167_p1 = pnand %p166_p0, %p160_p11 }
  0x20   :  { %170 = shalt.err (!%p167_p1)
}
  0x21   :  { %20 = dma.hbm_to_vmem [thread:$0]  %s299_s0, 256, %s18_s15, [#allocation5]  }
  0x22   :  { %s223_s8 = smov [#allocation9]   ;;  %s171_s12 = scalar_lea.hbm %s301_s2, 256 }
  0x23   :  { %s37_s9 = sshll.u32 %s223_s8, 4  ;;  %p172_p2 = scmp.ne.s32.totalorder %s301_s2, %s171_s12  ;;  %s38_s9 = int_to_ptr.vmem [resolvable:$true] %s37_s9 }
  0x24   :  { %p175_p3 = scmp.lt.u32.totalorder %s171_s12, %s301_s2 }
  0x26   :  { %p177_p4 = pnand %p175_p3, %p172_p2 }
  0x28   :  { %180 = shalt.err (!%p177_p4)
}
  0x29   :  { %s181_s18 = scalar_lea.vmem %s38_s9, 256  ;;  %p186_p6 = scmp.lt.s32.totalorder %s38_s9, %s38_s9 }
  0x2a   :  { %p182_p5 = scmp.ne.s32.totalorder %s38_s9, %s181_s18  ;;  %p187_p7 = scmp.lt.s32.totalorder %s181_s18, %s181_s18 }
  0x2c   :  { %p188_p8 = por %p187_p7, %p186_p6 }
  0x2e   :  { %p189_p9 = pnand %p188_p8, %p182_p5 }
  0x30   :  { %192 = shalt.err (!%p189_p9)
}
  0x31   :  { %40 = dma.hbm_to_vmem [thread:$0]  %s301_s2, 256, %s38_s9, [#allocation8]  }
  0x32   :  { %215 = dma.done.wait [#allocation5], 256  }
  0x33   :  { %216 = vsyncadd [#allocation5], 4294967040 }
  0x34   :  { %217 = dma.done.wait [#allocation8], 512  }
  0x35   :  { %218 = vsyncadd [#allocation8], 4294966784  ;;  %vm72_vm0 = vcmask 7168   ;;  %v224_v0 = vmov 0.0   ;;  %v54_v1 = vld [vmem:[#allocation9] sm:$0xff]  ;;  %v55_v2 = vld [vmem:[#allocation9 + $0x8] sm:$0xff] }
  0x36   :  { %74 = vst.msk [vmem:[#allocation3] sm:$0xff] %vm72_vm0, %v224_v0  ;;  %73 = vst.msk [vmem:[#allocation2] sm:$0xff] %vm72_vm0, %v224_v0  ;;  %v50_v3 = vld [vmem:[#allocation4] sm:$0xff]  ;;  %v65_v4 = vadd.f32 %v55_v2, %v54_v1  ;;  %v51_v5 = vld [vmem:[#allocation4 + $0x8] sm:$0xff]  ;;  %s225_s2 = smov [#allocation10]  }
  0x37   :  { %v52_v6 = vld [vmem:[#allocation7] sm:$0xff]  ;;  %v53_v7 = vld [vmem:[#allocation7 + $0x8] sm:$0xff]  ;;  %s108_s19 = sshll.u32 %s225_s2, 4  ;;  %s109_s19 = int_to_ptr.vmem [resolvable:$true] %s108_s19 }
  0x38   :  { %v56_v8 = vsub.f32 %v50_v3, %v52_v6  ;;  %v57_v9 = vsub.f32 %v51_v5, %v53_v7  ;;  %66 = vadd.xlane.f32.xlu0 %v65_v4  ;;  %s193_s21 = scalar_lea.vmem %s109_s19, 16  ;;  %s197_s22 = scalar_lea.vmem %s109_s19, 32 }
  0x39   :  { %p194_p10 = scmp.ne.s32.totalorder %s109_s19, %s193_s21  ;;  %p198_p11 = scmp.lt.s32.totalorder %s109_s19, %s109_s19 }
  0x3a   :  { %v58_v10 = vmul.f32 %v56_v8, %v56_v8  ;;  %v59_v11 = vmul.f32 %v57_v9, %v57_v9  ;;  %p199_p12 = scmp.lt.s32.totalorder %s197_s22, %s193_s21 }
  0x3c   :  { %v60_v12 = vmul.f32 %v58_v10, %v54_v1  ;;  %v61_v13 = vmul.f32 %v59_v11, %v55_v2  ;;  %p200_p13 = por %p199_p12, %p198_p11 }
  0x3d   :  { %v79_v15 = vld [vmem:[#allocation3] sm:$0xff]  ;;  %v75_v18 = vld [vmem:[#allocation2] sm:$0xff] }
  0x3e   :  { %v62_v14 = vadd.f32 %v61_v13, %v60_v12  ;;  %p201_p0 = pnand %p200_p13, %p194_p10 }
  0x40   :  { %63 = vadd.xlane.f32.xlu0 %v62_v14 }
  0xc5   :  { %v67_v16 = vpop.xlane.xlu0 %66 }
  0xc6   :  { %v80_v17 = vadd.f32 %v79_v15, %v67_v16 }
  0xc8   :  { %81 = vst.msk [vmem:[#allocation3] sm:$0xff] %vm72_vm0, %v80_v17 }
  0xcd   :  { %v64_v19 = vpop.xlane.xlu0 %63 }
  0xce   :  { %v76_v20 = vadd.f32 %v75_v18, %v64_v19 }
  0xcf   :  { %v86_v21 = vld [vmem:[#allocation3] sm:$0xff] }
  0xd0   :  { %78 = vst.msk [vmem:[#allocation2] sm:$0xff] %vm72_vm0, %v76_v20  ;;  %v87_v22 = vadd.f32 1.0, %v86_v21 }
  0xd2   :  { %125 = vrcp.f32 %v87_v22 }
  0xd7   :  { %v85_v23 = vld [vmem:[#allocation2] sm:$0xff] }
  0xdc   :  { %v126_v24 = vpop.eup %125 }
  0xdd   :  { %v89_v25 = vmul.f32 %v126_v24, %v85_v23 }
  0xdf   :  { %v90_v26 = vsel %vm72_vm0, %v89_v25, 0.0 }
  0xe0   :  { %91 = vadd.xlane.f32.xlu1 %v90_v26 }
 0x16d   :  { %v92_v27 = vpop.xlane.xlu1 %91 }
 0x16e   :  { %v93_v28 = vrot.slane %v92_v27, 4 }
 0x170   :  { %v94_v29 = vadd.f32 %v93_v28, %v92_v27 }
 0x172   :  { %v95_v30 = vrot.slane %v94_v29, 2 }
 0x174   :  { %v96_v31 = vadd.f32 %v95_v30, %v94_v29 }
 0x176   :  { %v97_v32 = vrot.slane %v96_v31, 1 }
 0x178   :  { %v98_v33 = vadd.f32 %v97_v32, %v96_v31 }
 0x17a   :  { %118 = vpush %v98_v33 }
 0x1ab   :  { %s119_s20 = spop %118 }
 0x1ac   :  { %v100_v34 = vstv %s119_s20 }
 0x1ad   :  { %101 = vst [vmem:[#allocation10] sm:$0x1] %v100_v34 }
 0x1ae   :  { %204 = shalt.err (!%p201_p0)
}
 0x1af   :  { %s205_s25 = scalar_lea.hbm %s302_s3, 16 }
 0x1b0   :  { %p206_p1 = scmp.ne.s32.totalorder %s302_s3, %s205_s25  ;;  %p209_p2 = scmp.lt.u32.totalorder %s205_s25, %s302_s3 }
 0x1b2   :  { %p211_p3 = pnand %p209_p2, %p206_p1 }
 0x1b4   :  { %214 = shalt.err (!%p211_p3)
}
 0x1b5   :  { %111 = dma.vmem_to_hbm [thread:$0]  %s109_s19, 16, %s302_s3, [#allocation6]  }
 0x1b6   :  { %219 = dma.done.wait [#allocation6], 16  }
 0x1b7   :  { %220 = vsyncadd [#allocation6], 4294967280 }
 0x1b8   :  { %115 = vsyncpa [#allocation5], 1 }
 0x1b9   :  { %116 = vsyncpa [#allocation8], 1 }
 0x1ba   :  { %117 = vsyncpa [#allocation6], 1 }

</bundles_post_ra>
